<compile_context>
chip_gen: v5e
topology: v5e:2x2
jax: 0.10.0
libtpu: 0.0.40
codegen_flags: <defaults>
</compile_context>

<pallas_src>
import math

import jax
import jax.numpy as jnp
from jax.experimental import pallas as pl
from jax.experimental.pallas import tpu as pltpu

NUM_PARAMS = 7      # packed, pre-folded parameter rows
LANES = 128         # TPU lane width
TBMAX_ROWS = 1280   # max rows per grid tile (multiple of the 40-row param period)


def tensor_ops_kernel(x_ref, p_ref, o_ref):
    prows = p_ref.shape[0] // NUM_PARAMS     # static: parameter period in rows
    n_groups = x_ref.shape[0] // prows       # static: groups per batch tile

    for g in range(n_groups):                # unrolled; all slices are static
        r0 = g * prows
        x = x_ref[r0:r0 + prows, :]          # (prows, 128) lane-dense group

        # Pre-folded, period-aligned parameter tiles (same shape as x, so all
        # ops below are pure elementwise -- no broadcast_in_dim inside the loop).
        w1p    = p_ref[0 * prows:1 * prows, :]   # 1 + weights1
        b1     = p_ref[1 * prows:2 * prows, :]   # bias1
        inv_c1 = p_ref[2 * prows:3 * prows, :]   # 1 / (constant1 + 0.1)
        b2     = p_ref[3 * prows:4 * prows, :]   # bias2
        w2     = p_ref[4 * prows:5 * prows, :]   # weights2
        c2     = p_ref[5 * prows:6 * prows, :]   # constant2
        b1c2   = p_ref[6 * prows:7 * prows, :]   # bias1 * constant2

        e = x * w1p + b1                    # == (x + bias1) + (x * weights1)
        c = x * inv_c1                      # == x / (constant1 + 0.1)
        d = x - b2
        f = c * d
        gq = e / (f + 0.1)                  # exact divide (tolerance-critical)
        h = gq * gq                         # torch.pow(g, 2)
        i = jnp.sqrt(h + 0.1)
        j = jnp.exp(i * w2)
        o_ref[r0:r0 + prows, :] = j * c2 + b1c2   # == (j + bias1) * constant2


def tensor_operations_model(x, w1, w2, b1, b2, c1, c2):
    """x: (B, F). Parameters/buffers: (F,) or (1, F). Returns (B, F)."""
    B, F = x.shape
    dtype = x.dtype

    # ---- Fold batch-invariant parameter math (once, outside the kernel) ----
    w1 = w1.reshape(-1).astype(dtype)
    w2 = w2.reshape(-1).astype(dtype)
    b1 = b1.reshape(-1).astype(dtype)
    b2 = b2.reshape(-1).astype(dtype)
    c1 = c1.reshape(-1).astype(dtype)
    c2 = c2.reshape(-1).astype(dtype)

    w1p = w1 + 1.0
    inv_c1 = 1.0 / (c1 + 0.1)
    b1c2 = b1 * c2
    param_rows = [w1p, b1, inv_c1, b2, w2, c2, b1c2]

    # ---- Periodic parameter tile for the flat (rows, 128) layout ----
    # Smallest row count whose flat length is a multiple of F (so the feature
    # pattern repeats exactly across tiles), rounded to a multiple of 8 sublanes.
    prows = math.lcm(math.lcm(F, LANES) // LANES, 8)        # 40 for F = 10
    per_idx = jnp.arange(prows * LANES, dtype=jnp.int32) % F
    params = jnp.concatenate(
        [r[per_idx].reshape(prows, LANES) for r in param_rows], axis=0
    )                                                        # (7*prows, 128)

    # ---- Lane-dense view of the batch: flatten, pad tail, view as (rows,128) ----
    n = B * F
    rows = -(-n // LANES)                                    # ceil(n / 128)
    rows = -(-rows // prows) * prows                         # multiple of param period
    groups_per_tile = max(1, min(rows // prows, TBMAX_ROWS // prows))
    tb = groups_per_tile * prows                             # tile rows (mult. of 8)
    rows_p = -(-rows // tb) * tb                             # divisible by the tile
    n_p = rows_p * LANES

    xf = x.reshape(n)                                        # free contiguous reshape
    if n_p != n:
        xf = jnp.pad(xf, (0, n_p - n))                       # one dense copy (ragged tail)
    x2 = xf.reshape(rows_p, LANES)

    out = pl.pallas_call(
        tensor_ops_kernel,
        out_shape=jax.ShapeDtypeStruct((rows_p, LANES), dtype),
        grid_spec=pltpu.PrefetchScalarGridSpec(
            num_scalar_prefetch=0,
            grid=(rows_p // tb,),
            in_specs=[
                # lane-dense batch tile, pipelined over the grid
                pl.BlockSpec((tb, LANES), lambda i: (i, 0)),
                # packed params: constant block index -> fetched once, resident
                pl.BlockSpec((NUM_PARAMS * prows, LANES), lambda i: (0, 0)),
            ],
            out_specs=pl.BlockSpec((tb, LANES), lambda i: (i, 0)),
        ),
        compiler_params=pltpu.CompilerParams(
            dimension_semantics=("parallel",)),
    )(x2, params)

    out = out.reshape(n_p)
    if n_p != n:
        out = out[:n]                                        # one dense slice
    return out.reshape(B, F)


if __name__ == "__main__":
    F = 10

    # Deterministic parameter init (mirrors TensorOperationsModel.__init__).
    weights1 = jnp.ones((F,), dtype=jnp.float32)
    weights2 = jnp.ones((F,), dtype=jnp.float32) * 0.5
    bias1 = jnp.zeros((F,), dtype=jnp.float32)
    bias2 = jnp.zeros((F,), dtype=jnp.float32) + 0.1
    constant1 = jnp.ones((F,), dtype=jnp.float32) * 2.0
    constant2 = jnp.ones((F,), dtype=jnp.float32) * 0.3

    def reference(x):
        a = x + bias1
        b = x * weights1
        c = x / (constant1 + 0.1)
        d = x - bias2
        e = a + b
        f = c * d
        g = e / (f + 0.1)
        h = g ** 2
        i = jnp.sqrt(h + 0.1)
        j = jnp.exp(i * weights2)
        k = j + bias1
        return k * constant2

    model = jax.jit(tensor_operations_model)

    # Module-spec shape: (batch=2, 10) -- single tiny grid step.
    x_small = jax.random.normal(jax.random.PRNGKey(0), (2, F), dtype=jnp.float32)
    out_small = model(x_small, weights1, weights2, bias1, bias2,
                      constant1, constant2)
    jax.block_until_ready(out_small)
    assert out_small.shape == (2, F)
    assert jnp.allclose(out_small, reference(x_small), atol=1e-5, rtol=1e-5)

    # Larger ragged batch: exercises the multi-tile grid and padded-tail path.
    x_big = jax.random.normal(jax.random.PRNGKey(1), (20480, F), dtype=jnp.float32)
    out_big = model(x_big, weights1, weights2, bias1, bias2,
                    constant1, constant2)
    jax.block_until_ready(out_big)
    assert out_big.shape == (20480, F)
    assert jnp.allclose(out_big, reference(x_big), atol=1e-5, rtol=1e-5)

    print("KERNEL_OK")
</pallas_src>

<mosaic_0001>
module attributes {stable_mosaic.version = 11 : i64} {
  func.func @tensor_ops_kernel(%arg0: i32, %arg1: memref<40x128xf32, #tpu.memory_space<vmem>>, %arg2: memref<280x128xf32, #tpu.memory_space<vmem>>, %arg3: memref<40x128xf32, #tpu.memory_space<vmem>>) attributes {dimension_semantics = [#tpu.dimension_semantics<parallel>], iteration_bounds = array<i64: 1>, scalar_prefetch = 0 : i64, scratch_operands = 0 : i64, tpu.core_type = #tpu.core_type<tc>, window_params = [{transform_indices = @transform_0, window_bounds = array<i64: 40, 128>}, {pipeline_mode = #tpu.pipeline_mode<synchronous>, transform_indices = @transform_1, window_bounds = array<i64: 280, 128>}, {transform_indices = @transform_2, window_bounds = array<i64: 40, 128>}]} {
    %c0 = arith.constant 0 : index
    %c0_0 = arith.constant 0 : index
    %0 = vector.load %arg1[%c0, %c0_0] : memref<40x128xf32, #tpu.memory_space<vmem>>, vector<40x128xf32>
    %c0_1 = arith.constant 0 : index
    %c0_2 = arith.constant 0 : index
    %1 = vector.load %arg2[%c0_1, %c0_2] : memref<280x128xf32, #tpu.memory_space<vmem>>, vector<40x128xf32>
    %c40 = arith.constant 40 : index
    %c0_3 = arith.constant 0 : index
    %2 = vector.load %arg2[%c40, %c0_3] : memref<280x128xf32, #tpu.memory_space<vmem>>, vector<40x128xf32>
    %c80 = arith.constant 80 : index
    %c0_4 = arith.constant 0 : index
    %3 = vector.load %arg2[%c80, %c0_4] : memref<280x128xf32, #tpu.memory_space<vmem>>, vector<40x128xf32>
    %c120 = arith.constant 120 : index
    %c0_5 = arith.constant 0 : index
    %4 = vector.load %arg2[%c120, %c0_5] : memref<280x128xf32, #tpu.memory_space<vmem>>, vector<40x128xf32>
    %c160 = arith.constant 160 : index
    %c0_6 = arith.constant 0 : index
    %5 = vector.load %arg2[%c160, %c0_6] : memref<280x128xf32, #tpu.memory_space<vmem>>, vector<40x128xf32>
    %c200 = arith.constant 200 : index
    %c0_7 = arith.constant 0 : index
    %6 = vector.load %arg2[%c200, %c0_7] : memref<280x128xf32, #tpu.memory_space<vmem>>, vector<40x128xf32>
    %c240 = arith.constant 240 : index
    %c0_8 = arith.constant 0 : index
    %7 = vector.load %arg2[%c240, %c0_8] : memref<280x128xf32, #tpu.memory_space<vmem>>, vector<40x128xf32>
    %8 = arith.mulf %0, %1 : vector<40x128xf32>
    %9 = arith.addf %8, %2 : vector<40x128xf32>
    %10 = arith.mulf %0, %3 : vector<40x128xf32>
    %11 = arith.subf %0, %4 : vector<40x128xf32>
    %12 = arith.mulf %10, %11 : vector<40x128xf32>
    %cst = arith.constant 1.000000e-01 : f32
    %13 = vector.broadcast %cst : f32 to vector<40x128xf32>
    %14 = arith.addf %12, %13 : vector<40x128xf32>
    %15 = arith.divf %9, %14 : vector<40x128xf32>
    %16 = arith.mulf %15, %15 : vector<40x128xf32>
    %cst_9 = arith.constant 1.000000e-01 : f32
    %17 = vector.broadcast %cst_9 : f32 to vector<40x128xf32>
    %18 = arith.addf %16, %17 : vector<40x128xf32>
    %19 = math.sqrt %18 : vector<40x128xf32>
    %20 = arith.mulf %19, %5 : vector<40x128xf32>
    %21 = math.exp %20 : vector<40x128xf32>
    %22 = arith.mulf %21, %6 : vector<40x128xf32>
    %23 = arith.addf %22, %7 : vector<40x128xf32>
    %c0_10 = arith.constant 0 : index
    %c0_11 = arith.constant 0 : index
    %24 = vector.load %arg3[%c0_10, %c0_11] : memref<40x128xf32, #tpu.memory_space<vmem>>, vector<40x128xf32>
    tpu.vector_store %arg3[%c0_10, %c0_11], %23 {strides = array<i32>} : memref<40x128xf32, #tpu.memory_space<vmem>>, vector<40x128xf32>,
    return
  }
  func.func @transform_0(%arg0: i32) -> (i32, i32) {
    %c0_i32 = arith.constant 0 : i32
    %c0_i32_0 = arith.constant 0 : i32
    return %arg0, %c0_i32 : i32, i32
  }
  func.func @transform_1(%arg0: i32) -> (i32, i32) {
    %c0_i32 = arith.constant 0 : i32
    %c0_i32_0 = arith.constant 0 : i32
    %c0_i32_1 = arith.constant 0 : i32
    return %c0_i32, %c0_i32_0 : i32, i32
  }
  func.func @transform_2(%arg0: i32) -> (i32, i32) {
    %c0_i32 = arith.constant 0 : i32
    %c0_i32_0 = arith.constant 0 : i32
    return %arg0, %c0_i32 : i32, i32
  }
}

</mosaic_0001>

<bundles_post_ra>
// kernel: mul.1
= control target key start
LH: loop header
LB: loop body
LE: loop exit
PB: predicated region body
PF: predicated region fallthrough
CT: control target
= control target key end

     0   :  { %s34_s0 = inlined_call_operand.vmem [shape: f32[10], index: 0, kind: input, shape index: {}]   ;;  %s35_s1 = inlined_call_operand.vmem [shape: f32[10], index: 1, kind: input, shape index: {}]   ;;  %s36_s2 = inlined_call_operand.vmem [shape: f32[10], index: 2, kind: output, shape index: {}]  }
   0x1   :  { %v3_v0 = vld [vmem:[%s34_s0] sm:$0x1] }
   0x2   :  { %v4_v1 = vld [vmem:[%s35_s1] sm:$0x1] }
   0x3   :  { %v7_v2 = vmul.f32 %v4_v1, %v3_v0 }
   0x5   :  { %9 = vst [vmem:[%s36_s2] sm:$0x1] %v7_v2 }

// kernel: tensor_operations_model.1
= control target key start
LH: loop header
LB: loop body
LE: loop exit
PB: predicated region body
PF: predicated region fallthrough
CT: control target
= control target key end

     0   :  { %s562_s0 = inlined_call_operand.vmem [shape: f32[40,128], index: 0, kind: input, shape index: {}]   ;;  %s563_s1 = inlined_call_operand.vmem [shape: f32[280,128], index: 1, kind: input, shape index: {}]   ;;  %s564_s2 = inlined_call_operand.vmem [shape: f32[40,128], index: 2, kind: output, shape index: {}]  }
   0x1   :  { %v11_v0 = vld [vmem:[%s562_s0] sm:$0xff]  ;;  %v26_v1 = vld [vmem:[%s563_s1 + $0x50] sm:$0xff]  ;;  %v31_v2 = vld [vmem:[%s563_s1 + $0x78] sm:$0xff] }
   0x2   :  { %v61_v3 = vmul.f32 %v26_v1, %v11_v0  ;;  %v66_v4 = vsub.f32 %v11_v0, %v31_v2  ;;  %v12_v5 = vld [vmem:[%s562_s0 + $0x8] sm:$0xff]  ;;  %v27_v6 = vld [vmem:[%s563_s1 + $0x58] sm:$0xff]  ;;  %v32_v8 = vld [vmem:[%s563_s1 + $0x80] sm:$0xff] }
   0x3   :  { %v62_v9 = vmul.f32 %v27_v6, %v12_v5  ;;  %v13_v10 = vld [vmem:[%s562_s0 + $0x10] sm:$0xff]  ;;  %v67_v11 = vsub.f32 %v12_v5, %v32_v8  ;;  %v28_v12 = vld [vmem:[%s563_s1 + $0x60] sm:$0xff]  ;;  %v33_v13 = vld [vmem:[%s563_s1 + $0x88] sm:$0xff] }
   0x4   :  { %v71_v7 = vmul.f32 %v66_v4, %v61_v3  ;;  %v63_v15 = vmul.f32 %v28_v12, %v13_v10  ;;  %v68_v16 = vsub.f32 %v13_v10, %v33_v13  ;;  %v14_v17 = vld [vmem:[%s562_s0 + $0x18] sm:$0xff]  ;;  %v29_v19 = vld [vmem:[%s563_s1 + $0x68] sm:$0xff]  ;;  %v34_v20 = vld [vmem:[%s563_s1 + $0x90] sm:$0xff] }
   0x5   :  { %v72_v18 = vmul.f32 %v67_v11, %v62_v9  ;;  %v16_v21 = vld [vmem:[%s563_s1] sm:$0xff]  ;;  %v17_v22 = vld [vmem:[%s563_s1 + $0x8] sm:$0xff]  ;;  %v18_v24 = vld [vmem:[%s563_s1 + $0x10] sm:$0xff]  ;;  %v64_v26 = vmul.f32 %v29_v19, %v14_v17  ;;  %v69_v29 = vsub.f32 %v14_v17, %v34_v20 }
   0x6   :  { %v76_v14 = vadd.f32 0.1, %v71_v7  ;;  %v73_v25 = vmul.f32 %v68_v16, %v63_v15  ;;  %v353_v27 = vld [vmem:[%s562_s0 + $0x20] sm:$0xff]  ;;  %v30_v28 = vld [vmem:[%s563_s1 + $0x70] sm:$0xff]  ;;  %v35_v30 = vld [vmem:[%s563_s1 + $0x98] sm:$0xff]  ;;  %v51_v31 = vmul.f32 %v16_v21, %v11_v0  ;;  %v52_v32 = vmul.f32 %v17_v22, %v12_v5 }
   0x7   :  { %v77_v23 = vadd.f32 0.1, %v72_v18  ;;  %v19_v33 = vld [vmem:[%s563_s1 + $0x18] sm:$0xff]  ;;  %v53_v34 = vmul.f32 %v18_v24, %v13_v10  ;;  %v74_v36 = vmul.f32 %v69_v29, %v64_v26  ;;  %v65_v37 = vmul.f32 %v30_v28, %v353_v27  ;;  %v21_v38 = vld [vmem:[%s563_s1 + $0x28] sm:$0xff]  ;;  %v22_v39 = vld [vmem:[%s563_s1 + $0x30] sm:$0xff] }
   0x8   :  { %260 = vrcp.f32 %v76_v14  ;;  %v364_v35 = vadd.f32 0.1, %v73_v25  ;;  %v23_v40 = vld [vmem:[%s563_s1 + $0x38] sm:$0xff]  ;;  %v70_v41 = vsub.f32 %v353_v27, %v35_v30  ;;  %v54_v43 = vmul.f32 %v19_v33, %v14_v17  ;;  %v24_v51 = vld [vmem:[%s563_s1 + $0x40] sm:$0xff] }
   0x9   :  { %262 = vrcp.f32 %v77_v23  ;;  %v92_v45 = vand.u32 2147483648, %v76_v14  ;;  %v378_v46 = vadd.f32 0.1, %v74_v36  ;;  %v56_v48 = vadd.f32 %v51_v31, %v21_v38  ;;  %v20_v21 = vld [vmem:[%s563_s1 + $0x20] sm:$0xff] }
   0xa   :  { %264 = vrcp.f32 %v364_v35  ;;  %v75_v47 = vmul.f32 %v70_v41, %v65_v37  ;;  %vm86_vm0 = vweird.f32 %v76_v14  ;;  %v57_v49 = vadd.f32 %v52_v32, %v22_v39 }
   0xb   :  { %v380_v50 = vadd.f32 %v53_v34, %v23_v40  ;;  %v90_v54 = vand.u32 2147483647, %v76_v14  ;;  %266 = vrcp.f32 %v378_v46  ;;  %v105_v56 = vand.u32 2147483647, %v77_v23 }
   0xc   :  { %v107_v57 = vand.u32 2147483648, %v77_v23  ;;  %v386_v58 = vadd.f32 0.1, %v75_v47  ;;  %v93_v60 = vor.u32 1.1754944e-38, %v92_v45  ;;  %v120_v61 = vand.u32 2147483647, %v364_v35 }
   0xd   :  { %v389_v62 = vadd.f32 %v54_v43, %v24_v51  ;;  %vm101_vm3 = vweird.f32 %v77_v23  ;;  %vm91_vm5 = vcmp.eq.f32.partialorder %v90_v54, 8.507059e+37  ;;  %v122_v4 = vand.u32 2147483648, %v364_v35 }
   0xe   :  { %v261_v42 = vpop.eup %260  ;;  %268 = vrcp.f32 %v386_v58  ;;  %vm399_vm6 = vcmp.eq.f32.partialorder %v105_v56, 8.507059e+37  ;;  %v108_v7 = vor.u32 1.1754944e-38, %v107_v57  ;;  %vm116_vm7 = vweird.f32 %v364_v35 }
   0xf   :  { %v82_v44 = vmul.f32 %v261_v42, %v76_v14  ;;  %v263_v52 = vpop.eup %262  ;;  %vm87_vm1 = vweird.f32 %v261_v42  ;;  %vm410_vm10 = vcmp.eq.f32.partialorder %v120_v61, 8.507059e+37  ;;  %v135_v16 = vand.u32 2147483647, %v378_v46 }
  0x10   :  { %v97_v55 = vmul.f32 %v263_v52, %v77_v23  ;;  %v265_v63 = vpop.eup %264  ;;  %vm392_vm2 = vmor %vm86_vm0, %vm87_vm1  ;;  %vm102_vm4 = vweird.f32 %v263_v52  ;;  %v123_v19 = vor.u32 1.1754944e-38, %v122_v4  ;;  %v137_v20 = vand.u32 2147483648, %v378_v46 }
  0x11   :  { %v83_v53 = vsub.f32 1.0, %v82_v44  ;;  %v112_v3 = vmul.f32 %v265_v63, %v364_v35  ;;  %v267_v8 = vpop.eup %266  ;;  %vm406_vm8 = vmor %vm101_vm3, %vm102_vm4  ;;  %vm117_vm9 = vweird.f32 %v265_v63  ;;  %vm131_vm12 = vweird.f32 %v378_v46 }
  0x12   :  { %v98_v1 = vsub.f32 1.0, %v97_v55  ;;  %v127_v15 = vmul.f32 %v267_v8, %v378_v46  ;;  %vm424_vm11 = vmor %vm116_vm7, %vm117_vm9  ;;  %vm132_vm13 = vweird.f32 %v267_v8  ;;  %vm432_vm14 = vcmp.eq.f32.partialorder %v135_v16, 8.507059e+37  ;;  %v36_v16 = vld [vmem:[%s563_s1 + $0xa0] sm:$0xff] }
  0x13   :  { %v84_v59 = vmul.f32 %v261_v42, %v83_v53  ;;  %v113_v11 = vsub.f32 1.0, %v112_v3  ;;  %v55_v34 = vmul.f32 %v20_v21, %v353_v27  ;;  %vm441_vm15 = vmor %vm131_vm12, %vm132_vm13  ;;  %v138_v38 = vor.u32 1.1754944e-38, %v137_v20 }
  0x14   :  { %v99_v5 = vmul.f32 %v263_v52, %v98_v1  ;;  %v269_v22 = vpop.eup %268  ;;  %v128_v25 = vsub.f32 1.0, %v127_v15  ;;  %v152_v43 = vand.u32 2147483648, %v386_v58  ;;  %vm146_vm0 = vweird.f32 %v386_v58 }
  0x15   :  { %v85_v2 = vadd.f32 %v261_v42, %v84_v59  ;;  %v114_v18 = vmul.f32 %v265_v63, %v113_v11  ;;  %v142_v30 = vmul.f32 %v269_v22, %v386_v58  ;;  %vm147_vm1 = vweird.f32 %v269_v22 }
  0x16   :  { %v100_v14 = vadd.f32 %v263_v52, %v99_v5  ;;  %v129_v32 = vmul.f32 %v267_v8, %v128_v25  ;;  %v150_v27 = vand.u32 2147483647, %v386_v58  ;;  %v153_v51 = vor.u32 1.1754944e-38, %v152_v43 }
  0x17   :  { %v89_v9 = vsel %vm392_vm2, %v261_v42, %v85_v2  ;;  %v115_v29 = vadd.f32 %v265_v63, %v114_v18  ;;  %v143_v39 = vsub.f32 1.0, %v142_v30  ;;  %vm148_vm2 = vmor %vm146_vm0, %vm147_vm1 }
  0x18   :  { %v94_v13 = vsel %vm91_vm5, %v93_v60, %v89_v9  ;;  %v104_v23 = vsel %vm406_vm8, %v263_v52, %v100_v14  ;;  %v130_v42 = vadd.f32 %v267_v8, %v129_v32  ;;  %vm151_vm3 = vcmp.eq.f32.partialorder %v150_v27, 8.507059e+37 }
  0x19   :  { %v95_v17 = vmul.f32 %v94_v13, %v56_v48  ;;  %v109_v28 = vsel %vm399_vm6, %v108_v7, %v104_v23  ;;  %v119_v36 = vsel %vm424_vm11, %v265_v63, %v115_v29  ;;  %v144_v47 = vmul.f32 %v269_v22, %v143_v39 }
  0x1a   :  { %v110_v31 = vmul.f32 %v109_v28, %v57_v49  ;;  %v124_v41 = vsel %vm410_vm10, %v123_v19, %v119_v36  ;;  %v134_v46 = vsel %vm441_vm15, %v267_v8, %v130_v42  ;;  %v25_v49 = vld [vmem:[%s563_s1 + $0x48] sm:$0xff]  ;;  %v38_v42 = vld [vmem:[%s563_s1 + $0xb0] sm:$0xff] }
  0x1b   :  { %v156_v26 = vmul.f32 %v95_v17, %v95_v17  ;;  %v125_v45 = vmul.f32 %v124_v41, %v380_v50  ;;  %v139_v48 = vsel %vm432_vm14, %v138_v38, %v134_v46  ;;  %v145_v54 = vadd.f32 %v269_v22, %v144_v47 }
  0x1c   :  { %v157_v40 = vmul.f32 %v110_v31, %v110_v31  ;;  %v140_v53 = vmul.f32 %v139_v48, %v389_v62  ;;  %v60_v50 = vadd.f32 %v55_v34, %v25_v49  ;;  %v41_v48 = vld [vmem:[%s563_s1 + $0xc8] sm:$0xff] }
  0x1d   :  { %v437_v35 = vadd.f32 0.1, %v156_v26  ;;  %v158_v52 = vmul.f32 %v125_v45, %v125_v45  ;;  %v149_v58 = vsel %vm148_vm2, %v269_v22, %v145_v54  ;;  %v37_v26 = vld [vmem:[%s563_s1 + $0xa8] sm:$0xff] }
  0x1e   :  { %v451_v44 = vadd.f32 0.1, %v157_v40  ;;  %v159_v57 = vmul.f32 %v140_v53, %v140_v53  ;;  %v154_v60 = vsel %vm151_vm3, %v153_v51, %v149_v58  ;;  %v39_v51 = vld [vmem:[%s563_s1 + $0xb8] sm:$0xff] }
  0x1f   :  { %270 = vrsqrt.f32 %v437_v35  ;;  %v463_v56 = vadd.f32 0.1, %v158_v52  ;;  %v155_v1 = vmul.f32 %v154_v60, %v60_v50  ;;  %vm173_vm4 = vcmp.eq.f32.partialorder %v437_v35, inf  ;;  %v46_v50 = vld [vmem:[%s563_s1 + $0xf0] sm:$0xff] }
  0x20   :  { %272 = vrsqrt.f32 %v451_v44  ;;  %v467_v0 = vadd.f32 0.1, %v159_v57  ;;  %v176_v11 = vand.u32 2147483648, %v437_v35  ;;  %vm175_vm5 = vcmp.eq.f32.partialorder %v437_v35, 0.0 }
  0x21   :  { %274 = vrsqrt.f32 %v463_v56  ;;  %v160_v4 = vmul.f32 %v155_v1, %v155_v1  ;;  %vm185_vm6 = vcmp.eq.f32.partialorder %v451_v44, inf  ;;  %v188_v20 = vand.u32 2147483648, %v451_v44 }
  0x22   :  { %276 = vrsqrt.f32 %v467_v0  ;;  %vm187_vm7 = vcmp.eq.f32.partialorder %v451_v44, 0.0  ;;  %vm197_vm8 = vcmp.eq.f32.partialorder %v463_v56, inf  ;;  %v200_v37 = vand.u32 2147483648, %v463_v56 }
  0x23   :  { %v471_v8 = vadd.f32 0.1, %v160_v4  ;;  %vm199_vm9 = vcmp.eq.f32.partialorder %v463_v56, 0.0  ;;  %vm209_vm10 = vcmp.eq.f32.partialorder %v467_v0, inf  ;;  %vm211_vm11 = vcmp.eq.f32.partialorder %v467_v0, 0.0 }
  0x25   :  { %v271_v55 = vpop.eup %270  ;;  %278 = vrsqrt.f32 %v471_v8  ;;  %vm221_vm12 = vcmp.eq.f32.partialorder %v471_v8, inf  ;;  %vm223_vm13 = vcmp.eq.f32.partialorder %v471_v8, 0.0 }
  0x26   :  { %v167_v59 = vmul.f32 %v271_v55, %v437_v35  ;;  %v273_v61 = vpop.eup %272 }
  0x27   :  { %v179_v62 = vmul.f32 %v273_v61, %v451_v44  ;;  %v275_v6 = vpop.eup %274 }
  0x28   :  { %v168_v63 = vmul.f32 %v271_v55, %v167_v59  ;;  %v191_v10 = vmul.f32 %v275_v6, %v463_v56  ;;  %v277_v13 = vpop.eup %276  ;;  %v42_v59 = vld [vmem:[%s563_s1 + $0xd0] sm:$0xff] }
  0x29   :  { %v180_v3 = vmul.f32 %v273_v61, %v179_v62  ;;  %v203_v18 = vmul.f32 %v277_v13, %v467_v0  ;;  %v47_v62 = vld [vmem:[%s563_s1 + $0xf8] sm:$0xff] }
  0x2a   :  { %v169_v2 = vmul.f32 0.5, %v168_v63  ;;  %v192_v15 = vmul.f32 %v275_v6, %v191_v10 }
  0x2b   :  { %v181_v7 = vmul.f32 0.5, %v180_v3  ;;  %v204_v24 = vmul.f32 %v277_v13, %v203_v18  ;;  %v279_v29 = vpop.eup %278  ;;  %v40_v3 = vld [vmem:[%s563_s1 + $0xc0] sm:$0xff] }
  0x2c   :  { %v170_v5 = vsub.f32 1.5, %v169_v2  ;;  %v193_v21 = vmul.f32 0.5, %v192_v15 }
  0x2d   :  { %v182_v12 = vsub.f32 1.5, %v181_v7  ;;  %v205_v31 = vmul.f32 0.5, %v204_v24 }
  0x2e   :  { %v171_v9 = vmul.f32 %v271_v55, %v170_v5  ;;  %v194_v28 = vsub.f32 1.5, %v193_v21 }
  0x2f   :  { %v183_v17 = vmul.f32 %v273_v61, %v182_v12  ;;  %v206_v38 = vsub.f32 1.5, %v205_v31  ;;  %v224_v61 = vand.u32 2147483648, %v471_v8 }
  0x30   :  { %v172_v14 = vmul.f32 %v171_v9, %v437_v35  ;;  %v195_v34 = vmul.f32 %v275_v6, %v194_v28  ;;  %v43_v9 = vld [vmem:[%s563_s1 + $0xd8] sm:$0xff] }
  0x31   :  { %v184_v23 = vmul.f32 %v183_v17, %v451_v44  ;;  %v207_v43 = vmul.f32 %v277_v13, %v206_v38  ;;  %v49_v17 = vld [vmem:[%s563_s1 + $0x108] sm:$0xff] }
  0x32   :  { %v174_v19 = vsel %vm173_vm4, %v437_v35, %v172_v14  ;;  %v215_v35 = vmul.f32 %v279_v29, %v471_v8  ;;  %v196_v39 = vmul.f32 %v195_v34, %v463_v56  ;;  %v44_v14 = vld [vmem:[%s563_s1 + $0xe0] sm:$0xff] }
  0x33   :  { %v177_v22 = vsel %vm175_vm5, %v176_v11, %v174_v19  ;;  %v186_v30 = vsel %vm185_vm6, %v451_v44, %v184_v23  ;;  %v212_v44 = vand.u32 2147483648, %v467_v0  ;;  %v208_v47 = vmul.f32 %v207_v43, %v467_v0 }
  0x34   :  { %v226_v25 = vmul.f32 %v177_v22, %v36_v16  ;;  %v189_v33 = vsel %vm187_vm7, %v188_v20, %v186_v30  ;;  %v216_v40 = vmul.f32 %v279_v29, %v215_v35  ;;  %v198_v27 = vsel %vm197_vm8, %v463_v56, %v196_v39  ;;  %v45_v20 = vld [vmem:[%s563_s1 + $0xe8] sm:$0xff]  ;;  %v50_v22 = vld [vmem:[%s563_s1 + $0x110] sm:$0xff] }
  0x35   :  { %v227_v36 = vmul.f32 %v189_v33, %v37_v26  ;;  %v201_v46 = vsel %vm199_vm9, %v200_v37, %v198_v27  ;;  %v210_v53 = vsel %vm209_vm10, %v467_v0, %v208_v47 }
  0x36   :  { %v231_v32 = vmul.f32 1.442695, %v226_v25  ;;  %v217_v45 = vmul.f32 0.5, %v216_v40  ;;  %v228_v49 = vmul.f32 %v201_v46, %v38_v42  ;;  %v213_v56 = vsel %vm211_vm11, %v212_v44, %v210_v53 }
  0x37   :  { %v233_v41 = vmul.f32 1.442695, %v227_v36  ;;  %v229_v60 = vmul.f32 %v213_v56, %v39_v51 }
  0x38   :  { %280 = vpow2.f32 %v231_v32  ;;  %v218_v52 = vsub.f32 1.5, %v217_v45  ;;  %v235_v55 = vmul.f32 1.442695, %v228_v49 }
  0x39   :  { %282 = vpow2.f32 %v233_v41  ;;  %v237_v2 = vmul.f32 1.442695, %v229_v60 }
  0x3a   :  { %v219_v57 = vmul.f32 %v279_v29, %v218_v52  ;;  %284 = vpow2.f32 %v235_v55 }
  0x3b   :  { %286 = vpow2.f32 %v237_v2 }
  0x3c   :  { %v220_v63 = vmul.f32 %v219_v57, %v471_v8 }
  0x3e   :  { %v281_v54 = vpop.eup %280  ;;  %v222_v5 = vsel %vm221_vm12, %v471_v8, %v220_v63  ;;  %v48_v8 = vld [vmem:[%s563_s1 + $0x100] sm:$0xff] }
  0x3f   :  { %v241_v58 = vmul.f32 %v281_v54, %v41_v48  ;;  %v283_v0 = vpop.eup %282  ;;  %v225_v6 = vsel %vm223_vm13, %v224_v61, %v222_v5 }
  0x40   :  { %v242_v4 = vmul.f32 %v283_v0, %v42_v59  ;;  %v230_v10 = vmul.f32 %v225_v6, %v40_v3  ;;  %v285_v11 = vpop.eup %284 }
  0x41   :  { %v246_v1 = vadd.f32 %v241_v58, %v46_v50  ;;  %v243_v13 = vmul.f32 %v285_v11, %v43_v9  ;;  %v287_v15 = vpop.eup %286 }
  0x42   :  { %v247_v7 = vadd.f32 %v242_v4, %v47_v62  ;;  %v239_v12 = vmul.f32 1.442695, %v230_v10  ;;  %v244_v18 = vmul.f32 %v287_v15, %v44_v14 }
  0x43   :  { %251 = vst [vmem:[%s564_s2] sm:$0xff] %v246_v1  ;;  %v248_v16 = vadd.f32 %v243_v13, %v48_v8 }
  0x44   :  { %252 = vst [vmem:[%s564_s2 + $0x8] sm:$0xff] %v247_v7  ;;  %288 = vpow2.f32 %v239_v12  ;;  %v249_v19 = vadd.f32 %v244_v18, %v49_v17 }
  0x45   :  { %253 = vst [vmem:[%s564_s2 + $0x10] sm:$0xff] %v248_v16 }
  0x46   :  { %254 = vst [vmem:[%s564_s2 + $0x18] sm:$0xff] %v249_v19 }
  0x4a   :  { %v289_v21 = vpop.eup %288 }
  0x4b   :  { %v245_v23 = vmul.f32 %v289_v21, %v45_v20 }
  0x4d   :  { %v250_v24 = vadd.f32 %v245_v23, %v50_v22 }
  0x4f   :  { %255 = vst [vmem:[%s564_s2 + $0x20] sm:$0xff] %v250_v24 }

</bundles_post_ra>
